<compile_context>
chip_gen: v6e
topology: v6e:2x2x1
jax: 0.10.0
libtpu: 0.0.40
codegen_flags: <defaults>
</compile_context>

<pallas_src>
import jax
import jax.numpy as jnp
from jax.experimental import pallas as pl
from jax.experimental.pallas import tpu as pltpu


def _round_up(a, b):
    return ((a + b - 1) // b) * b


def supff_kernel(x_ref,                 # (C,  tn)   compute dtype
                 w1_ref, b1_ref,        # (E1, C) cdt, (E1, 1) f32   embedder layer 1
                 w2_ref, b2_ref,        # (E2, E1) cdt, (E2, 1) f32  embedder layer 2
                 wf1a_ref, wf1b_ref,    # (H, E1), (H, E2) cdt       struct/FF layer 1 (split)
                 bf1_ref,               # (H, 1) f32
                 wf2_ref, bf2_ref,      # (n_out, H) cdt, (n_out, 1) f32  struct/FF layer 2
                 out_ref):              # (n_out, tn) f32
    cdt = x_ref.dtype                   # matmul input dtype (f32 or bf16)
    x = x_ref[...]                                                    # (C, tn)

    # ---- embedder: Linear+ReLU stack, keep every layer's output ----
    # Transposed form: h^T = W^T @ x^T + b^T  (bias/ReLU in f32, accumulate in f32)
    h1 = jnp.dot(w1_ref[...], x, preferred_element_type=jnp.float32) + b1_ref[...]
    h1 = jnp.maximum(h1, 0.0)                                         # (E1, tn) f32
    h1c = h1.astype(cdt)
    h2 = jnp.dot(w2_ref[...], h1c, preferred_element_type=jnp.float32) + b2_ref[...]
    h2 = jnp.maximum(h2, 0.0)                                         # (E2, tn) f32

    # ---- struct module: 2-layer feed-forward ----
    # wf1^T @ concat([h1, h2])^T == wf1a^T @ h1^T + wf1b^T @ h2^T
    # (no sublane-axis concat / extra (E1+E2, tn) intermediate in VMEM)
    f1 = (jnp.dot(wf1a_ref[...], h1c, preferred_element_type=jnp.float32)
          + jnp.dot(wf1b_ref[...], h2.astype(cdt), preferred_element_type=jnp.float32)
          + bf1_ref[...])
    f1 = jnp.maximum(f1, 0.0)                                         # (H, tn) f32
    out = (jnp.dot(wf2_ref[...], f1.astype(cdt), preferred_element_type=jnp.float32)
           + bf2_ref[...])                                            # (n_out, tn) f32
    out_ref[...] = out.astype(out_ref.dtype)                          # lane-dense store


def supff_forward(x, params, *, tile_n=2048, compute_dtype=jnp.float32):
    """x: (N, C) float32.  params: dict of weights/biases (see init_params).

    Returns (N, n_classes) float32 (same interface as the PyTorch module).

    tile_n: row tile; it becomes the lane / MXU-N dimension of every matmul, so
    it is rounded to a multiple of 256 (full-width v6e/v7x MXU; 128-aligned for
    v5e) and clamped to round_up(cdiv(N,2), 256) so v7x megacore gets >= 2 grid
    steps whenever N > 256.  Lane-padded VMEM footprint at 2048 is < 2 MiB;
    sweep up to ~4096 on v7x (64 MiB VMEM) and ~8192 on v5e/v6e.

    compute_dtype: dtype of the matmul inputs (x, weights, re-cast activations).
    jnp.bfloat16 is MXU-native on v6e/v7x (f32 accumulation is always used);
    expect ~1e-2-level deviation from the f32 reference.
    """
    N, C = x.shape
    E1 = params["w1"].shape[1]
    E2 = params["w2"].shape[1]
    H = params["wf1"].shape[1]
    n_out = params["wf2"].shape[1]
    cdt = jnp.dtype(compute_dtype)

    LANE = 256  # MXU N-width on v6e/v7x (128 would suffice on v5e)
    tile_n = _round_up(max(int(tile_n), LANE), LANE)
    # guarantee >= 2 grid steps when the problem allows it, so the "parallel"
    # row axis shards across both v7x TensorCores
    tile_n = min(tile_n, _round_up(pl.cdiv(N, 2), LANE))
    n_pad = _round_up(N, tile_n)
    grid = (n_pad // tile_n,)

    # ---- one-time wrapper-side layout plumbing (cheap XLA ops, not compute) ----
    xp = jnp.pad(x, ((0, n_pad - N), (0, 0))) if n_pad != N else x
    xt = xp.T.astype(cdt)                                             # (C, n_pad)

    w1t = params["w1"].T.astype(cdt)                                  # (E1, C)
    w2t = params["w2"].T.astype(cdt)                                  # (E2, E1)
    wf1at = params["wf1"][:E1].T.astype(cdt)                          # (H, E1)  split once:
    wf1bt = params["wf1"][E1:].T.astype(cdt)                          # (H, E2)  no concat in kernel
    wf2t = params["wf2"].T.astype(cdt)                                # (n_out, H)
    b1t = params["b1"].reshape(E1, 1).astype(jnp.float32)             # biases stay f32
    b2t = params["b2"].reshape(E2, 1).astype(jnp.float32)
    bf1t = params["bf1"].reshape(H, 1).astype(jnp.float32)
    bf2t = params["bf2"].reshape(n_out, 1).astype(jnp.float32)

    def resident(shape):
        # Constant block index across the row grid -> block is not re-DMA'd per
        # step; weights/biases stay resident in VMEM for the whole kernel.
        return pl.BlockSpec(shape, lambda i: (0, 0))

    w_elems = C * E1 + E1 * E2 + (E1 + E2) * H + H * n_out
    b_elems = E1 + E2 + H + n_out
    cost = pl.CostEstimate(
        flops=2 * N * (C * E1 + E1 * E2 + (E1 + E2) * H + H * n_out),
        transcendentals=0,
        bytes_accessed=(cdt.itemsize * (n_pad * C + w_elems)
                        + 4 * (n_pad * n_out + b_elems)))

    out_t = pl.pallas_call(
        supff_kernel,
        out_shape=jax.ShapeDtypeStruct((n_out, n_pad), jnp.float32),
        grid_spec=pltpu.PrefetchScalarGridSpec(
            num_scalar_prefetch=0,
            grid=grid,
            in_specs=[
                pl.BlockSpec((C, tile_n), lambda i: (0, i)),          # x^T row tile (lane-dense)
                resident((E1, C)),  resident((E1, 1)),                # w1^T, b1^T
                resident((E2, E1)), resident((E2, 1)),                # w2^T, b2^T
                resident((H, E1)),  resident((H, E2)),                # wf1a^T, wf1b^T
                resident((H, 1)),                                     # bf1^T
                resident((n_out, H)), resident((n_out, 1)),           # wf2^T, bf2^T
            ],
            out_specs=pl.BlockSpec((n_out, tile_n), lambda i: (0, i)),
        ),
        compiler_params=pltpu.CompilerParams(
            dimension_semantics=("parallel",)),                       # megacore sharding on v7x
        cost_estimate=cost,
    )(xt,
      w1t, b1t,
      w2t, b2t,
      wf1at, wf1bt, bf1t,
      wf2t, bf2t)

    # back to the module's (N, n_classes) interface; drop padded rows
    return out_t[:, :N].T


def init_params(key, in_channels, emb_layers_out_chnls, hidden, n_classes):
    """Deterministic synthetic parameter init (no checkpoint load)."""
    E1, E2 = emb_layers_out_chnls
    ks = jax.random.split(key, 8)

    def lin(kw, kb, din, dout):
        scale = 1.0 / jnp.sqrt(jnp.float32(din))
        w = jax.random.uniform(kw, (din, dout), jnp.float32, -scale, scale)
        b = jax.random.uniform(kb, (1, dout), jnp.float32, -scale, scale)
        return w, b

    w1, b1 = lin(ks[0], ks[1], in_channels, E1)
    w2, b2 = lin(ks[2], ks[3], E1, E2)
    wf1, bf1 = lin(ks[4], ks[5], E1 + E2, hidden)
    wf2, bf2 = lin(ks[6], ks[7], hidden, n_classes)
    return dict(w1=w1, b1=b1, w2=w2, b2=b2,
                wf1=wf1, bf1=bf1, wf2=wf2, bf2=bf2)


def supff_reference(x, p):
    """Plain-JAX reference of the same forward (for correctness check)."""
    h1 = jnp.maximum(x @ p["w1"] + p["b1"], 0.0)
    h2 = jnp.maximum(h1 @ p["w2"] + p["b2"], 0.0)
    emb = jnp.concatenate([h1, h2], axis=-1)
    f1 = jnp.maximum(emb @ p["wf1"] + p["bf1"], 0.0)
    return f1 @ p["wf2"] + p["bf2"]


if __name__ == "__main__":
    key = jax.random.PRNGKey(0)
    k_x, k_p = jax.random.split(key)

    # shapes consistent with the module (small feature dims, variable batch)
    in_channels = 4
    emb_layers_out_chnls = (16, 32)   # sum = 48 feeds the struct module
    hidden, n_classes = 32, 8
    params = init_params(k_p, in_channels, emb_layers_out_chnls, hidden, n_classes)

    # N=100: grid=(1,), exercises pad/slice.  N=1000: grid=(2,), exercises
    # multi-tile + the v7x megacore "parallel" split.
    for N in (100, 1000):
        x = jax.random.normal(jax.random.fold_in(k_x, N), (N, in_channels),
                              dtype=jnp.float32)
        ref = supff_reference(x, params)

        # f32 matmul path — must match the reference tightly.
        out = jax.block_until_ready(supff_forward(x, params))
        assert out.shape == (N, n_classes)
        assert jnp.allclose(out, ref, atol=1e-4, rtol=1e-4)

        # bf16 matmul inputs (f32 accumulate) — MXU-native on v6e/v7x;
        # looser tolerance for the bf16 input rounding.
        out_bf16 = jax.block_until_ready(
            supff_forward(x, params, compute_dtype=jnp.bfloat16))
        assert out_bf16.shape == (N, n_classes)
        assert jnp.allclose(out_bf16, ref, atol=5e-2, rtol=5e-2)

    print("KERNEL_OK")
</pallas_src>

<mosaic_0001>
module attributes {stable_mosaic.version = 11 : i64} {
  func.func @supff_kernel(%arg0: i32, %arg1: memref<4x256xf32, #tpu.memory_space<vmem>>, %arg2: memref<16x4xf32, #tpu.memory_space<vmem>>, %arg3: memref<16x1xf32, #tpu.memory_space<vmem>>, %arg4: memref<32x16xf32, #tpu.memory_space<vmem>>, %arg5: memref<32x1xf32, #tpu.memory_space<vmem>>, %arg6: memref<32x16xf32, #tpu.memory_space<vmem>>, %arg7: memref<32x32xf32, #tpu.memory_space<vmem>>, %arg8: memref<32x1xf32, #tpu.memory_space<vmem>>, %arg9: memref<8x32xf32, #tpu.memory_space<vmem>>, %arg10: memref<8x1xf32, #tpu.memory_space<vmem>>, %arg11: memref<8x256xf32, #tpu.memory_space<vmem>>) attributes {dimension_semantics = [#tpu.dimension_semantics<parallel>], iteration_bounds = array<i64: 1>, scalar_prefetch = 0 : i64, scratch_operands = 0 : i64, tpu.core_type = #tpu.core_type<tc>, window_params = [{transform_indices = @transform_0, window_bounds = array<i64: 4, 256>}, {pipeline_mode = #tpu.pipeline_mode<synchronous>, transform_indices = @transform_1, window_bounds = array<i64: 16, 4>}, {pipeline_mode = #tpu.pipeline_mode<synchronous>, transform_indices = @transform_2, window_bounds = array<i64: 16, 1>}, {pipeline_mode = #tpu.pipeline_mode<synchronous>, transform_indices = @transform_3, window_bounds = array<i64: 32, 16>}, {pipeline_mode = #tpu.pipeline_mode<synchronous>, transform_indices = @transform_4, window_bounds = array<i64: 32, 1>}, {pipeline_mode = #tpu.pipeline_mode<synchronous>, transform_indices = @transform_5, window_bounds = array<i64: 32, 16>}, {pipeline_mode = #tpu.pipeline_mode<synchronous>, transform_indices = @transform_6, window_bounds = array<i64: 32, 32>}, {pipeline_mode = #tpu.pipeline_mode<synchronous>, transform_indices = @transform_7, window_bounds = array<i64: 32, 1>}, {pipeline_mode = #tpu.pipeline_mode<synchronous>, transform_indices = @transform_8, window_bounds = array<i64: 8, 32>}, {pipeline_mode = #tpu.pipeline_mode<synchronous>, transform_indices = @transform_9, window_bounds = array<i64: 8, 1>}, {transform_indices = @transform_10, window_bounds = array<i64: 8, 256>}]} {
    %c0 = arith.constant 0 : index
    %c0_0 = arith.constant 0 : index
    %0 = vector.load %arg1[%c0, %c0_0] : memref<4x256xf32, #tpu.memory_space<vmem>>, vector<4x256xf32>
    %c0_1 = arith.constant 0 : index
    %c0_2 = arith.constant 0 : index
    %1 = vector.load %arg2[%c0_1, %c0_2] : memref<16x4xf32, #tpu.memory_space<vmem>>, vector<16x4xf32>
    %cst = arith.constant dense<0.000000e+00> : vector<16x256xf32>
    %2 = tpu.matmul %1, %0, %cst {dimension_numbers = #tpu.dot_dimension_numbers<[1], [0], [0], [1], [0, 0, 1, 1], [], []>} : vector<16x4xf32>, vector<4x256xf32>, vector<16x256xf32> -> vector<16x256xf32>
    %c0_3 = arith.constant 0 : index
    %c0_4 = arith.constant 0 : index
    %3 = vector.load %arg3[%c0_3, %c0_4] : memref<16x1xf32, #tpu.memory_space<vmem>>, vector<16x1xf32>
    %4 = vector.broadcast %3 : vector<16x1xf32> to vector<16x256xf32>
    %5 = arith.addf %2, %4 : vector<16x256xf32>
    %cst_5 = arith.constant 0.000000e+00 : f32
    %6 = vector.broadcast %cst_5 : f32 to vector<16x256xf32>
    %7 = arith.maximumf %5, %6 : vector<16x256xf32>
    %c0_6 = arith.constant 0 : index
    %c0_7 = arith.constant 0 : index
    %8 = vector.load %arg4[%c0_6, %c0_7] : memref<32x16xf32, #tpu.memory_space<vmem>>, vector<32x16xf32>
    %cst_8 = arith.constant dense<0.000000e+00> : vector<32x256xf32>
    %9 = tpu.matmul %8, %7, %cst_8 {dimension_numbers = #tpu.dot_dimension_numbers<[1], [0], [0], [1], [0, 0, 1, 1], [], []>} : vector<32x16xf32>, vector<16x256xf32>, vector<32x256xf32> -> vector<32x256xf32>
    %c0_9 = arith.constant 0 : index
    %c0_10 = arith.constant 0 : index
    %10 = vector.load %arg5[%c0_9, %c0_10] : memref<32x1xf32, #tpu.memory_space<vmem>>, vector<32x1xf32>
    %11 = vector.broadcast %10 : vector<32x1xf32> to vector<32x256xf32>
    %12 = arith.addf %9, %11 : vector<32x256xf32>
    %cst_11 = arith.constant 0.000000e+00 : f32
    %13 = vector.broadcast %cst_11 : f32 to vector<32x256xf32>
    %14 = arith.maximumf %12, %13 : vector<32x256xf32>
    %c0_12 = arith.constant 0 : index
    %c0_13 = arith.constant 0 : index
    %15 = vector.load %arg6[%c0_12, %c0_13] : memref<32x16xf32, #tpu.memory_space<vmem>>, vector<32x16xf32>
    %cst_14 = arith.constant dense<0.000000e+00> : vector<32x256xf32>
    %16 = tpu.matmul %15, %7, %cst_14 {dimension_numbers = #tpu.dot_dimension_numbers<[1], [0], [0], [1], [0, 0, 1, 1], [], []>} : vector<32x16xf32>, vector<16x256xf32>, vector<32x256xf32> -> vector<32x256xf32>
    %c0_15 = arith.constant 0 : index
    %c0_16 = arith.constant 0 : index
    %17 = vector.load %arg7[%c0_15, %c0_16] : memref<32x32xf32, #tpu.memory_space<vmem>>, vector<32x32xf32>
    %cst_17 = arith.constant dense<0.000000e+00> : vector<32x256xf32>
    %18 = tpu.matmul %17, %14, %cst_17 {dimension_numbers = #tpu.dot_dimension_numbers<[1], [0], [0], [1], [0, 0, 1, 1], [], []>} : vector<32x32xf32>, vector<32x256xf32>, vector<32x256xf32> -> vector<32x256xf32>
    %19 = arith.addf %16, %18 : vector<32x256xf32>
    %c0_18 = arith.constant 0 : index
    %c0_19 = arith.constant 0 : index
    %20 = vector.load %arg8[%c0_18, %c0_19] : memref<32x1xf32, #tpu.memory_space<vmem>>, vector<32x1xf32>
    %21 = vector.broadcast %20 : vector<32x1xf32> to vector<32x256xf32>
    %22 = arith.addf %19, %21 : vector<32x256xf32>
    %cst_20 = arith.constant 0.000000e+00 : f32
    %23 = vector.broadcast %cst_20 : f32 to vector<32x256xf32>
    %24 = arith.maximumf %22, %23 : vector<32x256xf32>
    %c0_21 = arith.constant 0 : index
    %c0_22 = arith.constant 0 : index
    %25 = vector.load %arg9[%c0_21, %c0_22] : memref<8x32xf32, #tpu.memory_space<vmem>>, vector<8x32xf32>
    %cst_23 = arith.constant dense<0.000000e+00> : vector<8x256xf32>
    %26 = tpu.matmul %25, %24, %cst_23 {dimension_numbers = #tpu.dot_dimension_numbers<[1], [0], [0], [1], [0, 0, 1, 1], [], []>} : vector<8x32xf32>, vector<32x256xf32>, vector<8x256xf32> -> vector<8x256xf32>
    %c0_24 = arith.constant 0 : index
    %c0_25 = arith.constant 0 : index
    %27 = vector.load %arg10[%c0_24, %c0_25] : memref<8x1xf32, #tpu.memory_space<vmem>>, vector<8x1xf32>
    %28 = vector.broadcast %27 : vector<8x1xf32> to vector<8x256xf32>
    %29 = arith.addf %26, %28 : vector<8x256xf32>
    %c0_26 = arith.constant 0 : index
    %c0_27 = arith.constant 0 : index
    %30 = vector.load %arg11[%c0_26, %c0_27] : memref<8x256xf32, #tpu.memory_space<vmem>>, vector<8x256xf32>
    tpu.vector_store %arg11[%c0_26, %c0_27], %29 {strides = array<i32>} : memref<8x256xf32, #tpu.memory_space<vmem>>, vector<8x256xf32>,
    return
  }
  func.func @transform_0(%arg0: i32) -> (i32, i32) {
    %c0_i32 = arith.constant 0 : i32
    %c0_i32_0 = arith.constant 0 : i32
    return %c0_i32, %arg0 : i32, i32
  }
  func.func @transform_1(%arg0: i32) -> (i32, i32) {
    %c0_i32 = arith.constant 0 : i32
    %c0_i32_0 = arith.constant 0 : i32
    %c0_i32_1 = arith.constant 0 : i32
    return %c0_i32, %c0_i32_0 : i32, i32
  }
  func.func @transform_2(%arg0: i32) -> (i32, i32) {
    %c0_i32 = arith.constant 0 : i32
    %c0_i32_0 = arith.constant 0 : i32
    %c0_i32_1 = arith.constant 0 : i32
    return %c0_i32, %c0_i32_0 : i32, i32
  }
  func.func @transform_3(%arg0: i32) -> (i32, i32) {
    %c0_i32 = arith.constant 0 : i32
    %c0_i32_0 = arith.constant 0 : i32
    %c0_i32_1 = arith.constant 0 : i32
    return %c0_i32, %c0_i32_0 : i32, i32
  }
  func.func @transform_4(%arg0: i32) -> (i32, i32) {
    %c0_i32 = arith.constant 0 : i32
    %c0_i32_0 = arith.constant 0 : i32
    %c0_i32_1 = arith.constant 0 : i32
    return %c0_i32, %c0_i32_0 : i32, i32
  }
  func.func @transform_5(%arg0: i32) -> (i32, i32) {
    %c0_i32 = arith.constant 0 : i32
    %c0_i32_0 = arith.constant 0 : i32
    %c0_i32_1 = arith.constant 0 : i32
    return %c0_i32, %c0_i32_0 : i32, i32
  }
  func.func @transform_6(%arg0: i32) -> (i32, i32) {
    %c0_i32 = arith.constant 0 : i32
    %c0_i32_0 = arith.constant 0 : i32
    %c0_i32_1 = arith.constant 0 : i32
    return %c0_i32, %c0_i32_0 : i32, i32
  }
  func.func @transform_7(%arg0: i32) -> (i32, i32) {
    %c0_i32 = arith.constant 0 : i32
    %c0_i32_0 = arith.constant 0 : i32
    %c0_i32_1 = arith.constant 0 : i32
    return %c0_i32, %c0_i32_0 : i32, i32
  }
  func.func @transform_8(%arg0: i32) -> (i32, i32) {
    %c0_i32 = arith.constant 0 : i32
    %c0_i32_0 = arith.constant 0 : i32
    %c0_i32_1 = arith.constant 0 : i32
    return %c0_i32, %c0_i32_0 : i32, i32
  }
  func.func @transform_9(%arg0: i32) -> (i32, i32) {
    %c0_i32 = arith.constant 0 : i32
    %c0_i32_0 = arith.constant 0 : i32
    %c0_i32_1 = arith.constant 0 : i32
    return %c0_i32, %c0_i32_0 : i32, i32
  }
  func.func @transform_10(%arg0: i32) -> (i32, i32) {
    %c0_i32 = arith.constant 0 : i32
    %c0_i32_0 = arith.constant 0 : i32
    return %c0_i32, %arg0 : i32, i32
  }
}

</mosaic_0001>

<bundles_post_ra>
// kernel: tpu_custom_call.1
= control target key start
LH: loop header
LB: loop body
LE: loop exit
PB: predicated region body
PF: predicated region fallthrough
CT: control target
= control target key end

     0   :  { %vm60_vm0 = vcmask 1043456   ;;  %v677_v2 = vmov 0.0   ;;  %vm53_vm1 = vcmask 31744   ;;  %v678_v5 = vmov 0   ;;  %s847_s0 = inlined_call_operand.vmem [shape: f32[4,256], index: 0, kind: input, shape index: {}]   ;;  %s848_s1 = inlined_call_operand.vmem [shape: f32[16,4], index: 1, kind: input, shape index: {}]   ;;  %s849_s2 = inlined_call_operand.vmem [shape: f32[16,1], index: 2, kind: input, shape index: {}]   ;;  %s850_s3 = inlined_call_operand.vmem [shape: f32[32,16], index: 3, kind: input, shape index: {}]   ;;  %s851_s4 = inlined_call_operand.vmem [shape: f32[32,1], index: 4, kind: input, shape index: {}]   ;;  %s852_s5 = inlined_call_operand.vmem [shape: f32[32,16], index: 5, kind: input, shape index: {}]   ;;  %s853_s6 = inlined_call_operand.vmem [shape: f32[32,32], index: 6, kind: input, shape index: {}]   ;;  %s854_s7 = inlined_call_operand.vmem [shape: f32[32,1], index: 7, kind: input, shape index: {}]   ;;  %s855_s8 = inlined_call_operand.vmem [shape: f32[8,32], index: 8, kind: input, shape index: {}]   ;;  %s856_s9 = inlined_call_operand.vmem [shape: f32[8,1], index: 9, kind: input, shape index: {}]   ;;  %s857_s10 = inlined_call_operand.hbm [shape: f32[8,256], index: 10, kind: output, shape index: {}]  }
   0x1   :  { %v36_v0 = vld [vmem:[%s847_s0] sm:$0xff]  ;;  %129 = vmatprep.mubr.f32.mxu0 %v677_v2  ;;  %v40_v3 = vld [vmem:[%s849_s2 + $0x8] sm:$0xff]  ;;  %251 = vmatprep.mubr.f32.mxu1 %v677_v2 }
   0x2   :  { %v52_v1 = vcombine.high %v36_v0, %v36_v0  ;;  %v37_v4 = vld [vmem:[%s848_s1] sm:$0xff]  ;;  %652 = vset.pattern.permute.xlu0 %v678_v5  ;;  %653 = vset.pattern.permute.xlu1 %v678_v5 }
   0x3   :  { %48 = vperm.xlu0 %652, %v40_v3  }
   0x4   :  { %632 = vmatprep.subr.msk.mxu0 %vm60_vm0, %v52_v1 }
   0x5   :  { %15 = vsyncpa [#allocation3], 0  ;;  %633 = vmatpush1.msk.msra.mxu0 %vm60_vm0, %v36_v0  ;;  %v39_v6 = vld [vmem:[%s849_s2] sm:$0xff]  ;;  %v38_v7 = vld [vmem:[%s848_s1 + $0x8] sm:$0xff]  ;;  %vm174_vm2 = vcmask 130048   ;;  %vm292_vm3 = vcmask 261120  }
   0x6   :  { %634 = vmatmul.mubr.msk.f32.vlgmr.msra.gmra.mxu0 %vm53_vm1, %v37_v4  ;;  %v151_v8 = vld [vmem:[%s851_s4 + $0x8] sm:$0xff]  ;;  %v498_v9 = vld [vmem:[%s854_s7 + $0x18] sm:$0xff]  ;;  %v536_v11 = vld [vmem:[%s856_s9] sm:$0xff]  ;;  %s679_s15 = smov [#allocation2]  }
   0x7   :  { %135 = vmatprep.mubr.f32.mxu0 %v677_v2  ;;  %43 = vperm.xlu0 %652, %v39_v6   ;;  %v496_v10 = vld [vmem:[%s854_s7 + $0x8] sm:$0xff]  ;;  %v153_v12 = vld [vmem:[%s851_s4 + $0x18] sm:$0xff]  ;;  %v152_v13 = vld [vmem:[%s851_s4 + $0x10] sm:$0xff]  ;;  %s624_s9 = sshll.u32 %s679_s15, 4  ;;  %s625_s9 = int_to_ptr.vmem [resolvable:$true] %s624_s9 }
   0x8   :  { %171 = vperm.xlu1 %653, %v153_v12   ;;  %v150_v14 = vld [vmem:[%s851_s4] sm:$0xff]  ;;  %v497_v15 = vld [vmem:[%s854_s7 + $0x10] sm:$0xff]  ;;  %v147_v32 = vld [vmem:[%s850_s3 + $0x8] sm:$0xff]  ;;  %s655_s16 = scalar_lea.vmem %s625_s9, 256  ;;  %p660_p1 = scmp.lt.s32.totalorder %s625_s9, %s625_s9 }
   0x9   :  { %v495_v16 = vld [vmem:[%s854_s7] sm:$0xff]  ;;  %v148_v33 = vld [vmem:[%s850_s3 + $0x10] sm:$0xff]  ;;  %v149_v34 = vld [vmem:[%s850_s3 + $0x18] sm:$0xff]  ;;  %p656_p0 = scmp.ne.s32.totalorder %s625_s9, %s655_s16  ;;  %p661_p2 = scmp.lt.s32.totalorder %s655_s16, %s655_s16 }
   0xa   :  { %635 = vmatmul.mubr.msk.f32.gmra.mxu0 %vm53_vm1, %v38_v7  ;;  %v146_v31 = vld [vmem:[%s850_s3] sm:$0xff]  ;;  %v285_v36 = vld [vmem:[%s852_s5 + $0x8] sm:$0xff]  ;;  %v286_v37 = vld [vmem:[%s852_s5 + $0x10] sm:$0xff] }
   0xb   :  { %369 = vmatprep.mubr.f32.mxu0 %v677_v2  ;;  %161 = vperm.xlu0 %652, %v151_v8   ;;  %v284_v35 = vld [vmem:[%s852_s5] sm:$0xff]  ;;  %v287_v38 = vld [vmem:[%s852_s5 + $0x18] sm:$0xff]  ;;  %v289_v5 = vld [vmem:[%s853_s6 + $0x8] sm:$0xff]  ;;  %p662_p3 = por %p661_p2, %p660_p1 }
   0xc   :  { %166 = vperm.xlu1 %653, %v152_v13   ;;  %v288_v4 = vld [vmem:[%s853_s6] sm:$0xff]  ;;  %v290_v6 = vld [vmem:[%s853_s6 + $0x10] sm:$0xff]  ;;  %v291_v7 = vld [vmem:[%s853_s6 + $0x18] sm:$0xff] }
   0xd   :  { %p663_p4 = pnand %p662_p3, %p656_p0 }
   0xf   :  { %516 = vperm.xlu0 %652, %v498_v9  }
  0x10   :  { %156 = vperm.xlu1 %653, %v150_v14  }
  0x13   :  { %506 = vperm.xlu0 %652, %v496_v10  }
  0x14   :  { %511 = vperm.xlu1 %653, %v497_v15  }
  0x17   :  { %539 = vperm.xlu0 %652, %v536_v11  }
  0x18   :  { %501 = vperm.xlu1 %653, %v495_v16  }
  0x7e   :  { %v49_v17 = vpop.permute.xlu0 %48 }
  0x82   :  { %v44_v21 = vpop.permute.xlu0 %43 }
  0x83   :  { %v172_v42 = vpop.permute.xlu1 %171 }
  0x86   :  { %v162_v52 = vpop.permute.xlu0 %161 }
  0x87   :  { %v167_v46 = vpop.permute.xlu1 %166 }
  0x8b   :  { %v157_v54 = vpop.permute.xlu1 %156 }
  0xc6   :  { %v131_v18 = vpop.f32.mrf.mxu0 }
  0xc7   :  { %v132_v26 = vadd.f32 %v131_v18, %v44_v21 }
  0xc8   :  { %v133_v19 = vpop.f32.mrf.mxu0 }
  0xc9   :  { %v134_v24 = vadd.f32 %v133_v19, %v44_v21  ;;  %v142_v30 = vmax.f32 %v132_v26, 0.0  ;;  %v517_v21 = vpop.permute.xlu0 %516 }
  0xca   :  { %v137_v20 = vpop.f32.mrf.mxu0 }
  0xcb   :  { %v138_v22 = vadd.f32 %v137_v20, %v49_v17  ;;  %v143_v29 = vmax.f32 %v134_v24, 0.0 }
  0xcc   :  { %v139_v23 = vpop.f32.mrf.mxu0 }
  0xcd   :  { %v140_v25 = vadd.f32 %v139_v23, %v49_v17  ;;  %v144_v28 = vmax.f32 %v138_v22, 0.0  ;;  %v512_v23 = vpop.permute.xlu1 %511 }
  0xcf   :  { %v145_v27 = vmax.f32 %v140_v25, 0.0 }
  0xd1   :  { %215 = vmatprep.subr.mxu1 %v145_v27 }
  0xd2   :  { %216 = vmatpush1.msra.mxu1 %v144_v28 }
  0xd3   :  { %217 = vmatprep.subr.mxu1 %v143_v29 }
  0xd4   :  { %218 = vmatpush1.msra.mxu1 %v142_v30 }
  0xd5   :  { %636 = vmatmul.mubr.msk.f32.vlgmr.msra.gmra.mxu1 %vm174_vm2, %v146_v31  ;;  %434 = vmatprep.subr.mxu1 %v145_v27 }
  0xd6   :  { %435 = vmatpush1.msra.mxu1 %v144_v28  ;;  %257 = vmatprep.mubr.f32.mxu1 %v677_v2 }
  0xd7   :  { %436 = vmatprep.subr.mxu1 %v143_v29 }
  0xd8   :  { %437 = vmatpush1.msra.mxu1 %v142_v30 }
  0xd9   :  { %637 = vmatmul.mubr.msk.f32.gmra.mxu1 %vm174_vm2, %v147_v32 }
  0xda   :  { %263 = vmatprep.mubr.f32.mxu1 %v677_v2 }
  0xdd   :  { %638 = vmatmul.mubr.msk.f32.gmra.mxu1 %vm174_vm2, %v148_v33 }
  0xde   :  { %269 = vmatprep.mubr.f32.mxu1 %v677_v2 }
  0xe1   :  { %639 = vmatmul.mubr.msk.f32.gmra.mxu1 %vm174_vm2, %v149_v34 }
  0xe2   :  { %470 = vmatprep.mubr.f32.mxu1 %v677_v2 }
  0xe5   :  { %644 = vmatmul.mubr.msk.f32.vlgmr.msra.gmra.mxu1 %vm174_vm2, %v284_v35  ;;  %v507_v35 = vpop.permute.xlu0 %506 }
  0xe6   :  { %476 = vmatprep.mubr.f32.mxu1 %v677_v2 }
  0xe9   :  { %645 = vmatmul.mubr.msk.f32.gmra.mxu1 %vm174_vm2, %v285_v36 }
  0xea   :  { %482 = vmatprep.mubr.f32.mxu1 %v677_v2 }
  0xed   :  { %646 = vmatmul.mubr.msk.f32.gmra.mxu1 %vm174_vm2, %v286_v37 }
  0xee   :  { %488 = vmatprep.mubr.f32.mxu1 %v677_v2 }
  0xf1   :  { %647 = vmatmul.mubr.msk.f32.gmra.mxu1 %vm174_vm2, %v287_v38 }
 0x195   :  { %v253_v39 = vpop.f32.mrf.mxu1 }
 0x196   :  { %v254_v61 = vadd.f32 %v253_v39, %v157_v54 }
 0x197   :  { %v255_v40 = vpop.f32.mrf.mxu1 }
 0x198   :  { %v256_v59 = vadd.f32 %v255_v40, %v157_v54  ;;  %v276_v3 = vmax.f32 %v254_v61, 0.0  ;;  %v502_v40 = vpop.permute.xlu1 %501 }
 0x199   :  { %v259_v41 = vpop.f32.mrf.mxu1 }
 0x19a   :  { %v260_v57 = vadd.f32 %v259_v41, %v162_v52  ;;  %v277_v1 = vmax.f32 %v256_v59, 0.0 }
 0x19b   :  { %v261_v43 = vpop.f32.mrf.mxu1 }
 0x19c   :  { %v262_v55 = vadd.f32 %v261_v43, %v162_v52  ;;  %v278_v0 = vmax.f32 %v260_v57, 0.0  ;;  %v540_v52 = vpop.permute.xlu0 %539 }
 0x19d   :  { %v265_v44 = vpop.f32.mrf.mxu1 }
 0x19e   :  { %v266_v53 = vadd.f32 %v265_v44, %v167_v46  ;;  %v279_v63 = vmax.f32 %v262_v55, 0.0 }
 0x19f   :  { %v267_v45 = vpop.f32.mrf.mxu1 }
 0x1a0   :  { %v268_v50 = vadd.f32 %v267_v45, %v167_v46  ;;  %v280_v62 = vmax.f32 %v266_v53, 0.0 }
 0x1a1   :  { %v271_v47 = vpop.f32.mrf.mxu1 }
 0x1a2   :  { %v272_v48 = vadd.f32 %v271_v47, %v172_v42  ;;  %v281_v60 = vmax.f32 %v268_v50, 0.0 }
 0x1a3   :  { %v273_v49 = vpop.f32.mrf.mxu1 }
 0x1a4   :  { %v274_v51 = vadd.f32 %v273_v49, %v172_v42  ;;  %v282_v58 = vmax.f32 %v272_v48, 0.0 }
 0x1a5   :  { %v472_v8 = vpop.f32.mrf.mxu1 }
 0x1a6   :  { %v283_v56 = vmax.f32 %v274_v51, 0.0  ;;  %v535_v51 = vld [vmem:[%s855_s8] sm:$0xff] }
 0x1a7   :  { %v474_v9 = vpop.f32.mrf.mxu1 }
 0x1a8   :  { %329 = vmatprep.subr.mxu0 %v283_v56 }
 0x1a9   :  { %330 = vmatpush1.msra.mxu0 %v282_v58  ;;  %v478_v10 = vpop.f32.mrf.mxu1 }
 0x1aa   :  { %331 = vmatprep.subr.mxu0 %v281_v60 }
 0x1ab   :  { %332 = vmatpush1.msra.mxu0 %v280_v62  ;;  %v480_v11 = vpop.f32.mrf.mxu1 }
 0x1ac   :  { %333 = vmatprep.subr.mxu0 %v279_v63 }
 0x1ad   :  { %334 = vmatpush1.msra.mxu0 %v278_v0  ;;  %v484_v14 = vpop.f32.mrf.mxu1 }
 0x1ae   :  { %335 = vmatprep.subr.mxu0 %v277_v1 }
 0x1af   :  { %336 = vmatpush1.msra.mxu0 %v276_v3  ;;  %v486_v17 = vpop.f32.mrf.mxu1 }
 0x1b0   :  { %640 = vmatmul.mubr.msk.f32.vlgmr.msra.gmra.mxu0 %vm292_vm3, %v288_v4 }
 0x1b1   :  { %375 = vmatprep.mubr.f32.mxu0 %v677_v2  ;;  %v490_v20 = vpop.f32.mrf.mxu1 }
 0x1b4   :  { %641 = vmatmul.mubr.msk.f32.gmra.mxu0 %vm292_vm3, %v289_v5 }
 0x1b5   :  { %381 = vmatprep.mubr.f32.mxu0 %v677_v2 }
 0x1b8   :  { %642 = vmatmul.mubr.msk.f32.gmra.mxu0 %vm292_vm3, %v290_v6 }
 0x1b9   :  { %387 = vmatprep.mubr.f32.mxu0 %v677_v2 }
 0x1bc   :  { %643 = vmatmul.mubr.msk.f32.gmra.mxu0 %vm292_vm3, %v291_v7 }
 0x1bd   :  { %609 = vmatprep.mubr.f32.mxu0 %v677_v2  ;;  %v492_v2 = vpop.f32.mrf.mxu1 }
 0x270   :  { %v371_v12 = vpop.f32.mrf.mxu0 }
 0x271   :  { %v473_v36 = vadd.f32 %v472_v8, %v371_v12 }
 0x272   :  { %v373_v13 = vpop.f32.mrf.mxu0 }
 0x273   :  { %v475_v32 = vadd.f32 %v474_v9, %v373_v13  ;;  %v519_v45 = vadd.f32 %v502_v40, %v473_v36 }
 0x274   :  { %v377_v15 = vpop.f32.mrf.mxu0 }
 0x275   :  { %v479_v30 = vadd.f32 %v478_v10, %v377_v15  ;;  %v520_v43 = vadd.f32 %v502_v40, %v475_v32  ;;  %v527_v50 = vmax.f32 %v519_v45, 0.0 }
 0x276   :  { %v379_v16 = vpop.f32.mrf.mxu0 }
 0x277   :  { %v481_v28 = vadd.f32 %v480_v11, %v379_v16  ;;  %v521_v41 = vadd.f32 %v507_v35, %v479_v30  ;;  %v528_v49 = vmax.f32 %v520_v43, 0.0 }
 0x278   :  { %v383_v18 = vpop.f32.mrf.mxu0 }
 0x279   :  { %v485_v26 = vadd.f32 %v484_v14, %v383_v18  ;;  %v522_v38 = vadd.f32 %v507_v35, %v481_v28  ;;  %v529_v48 = vmax.f32 %v521_v41, 0.0 }
 0x27a   :  { %v385_v19 = vpop.f32.mrf.mxu0 }
 0x27b   :  { %v487_v24 = vadd.f32 %v486_v17, %v385_v19  ;;  %v523_v37 = vadd.f32 %v512_v23, %v485_v26  ;;  %v530_v47 = vmax.f32 %v522_v38, 0.0 }
 0x27c   :  { %v389_v22 = vpop.f32.mrf.mxu0 }
 0x27d   :  { %v491_v25 = vadd.f32 %v490_v20, %v389_v22  ;;  %v524_v33 = vadd.f32 %v512_v23, %v487_v24  ;;  %v531_v46 = vmax.f32 %v523_v37, 0.0 }
 0x27e   :  { %v391_v27 = vpop.f32.mrf.mxu0 }
 0x27f   :  { %v493_v29 = vadd.f32 %v492_v2, %v391_v27  ;;  %v525_v31 = vadd.f32 %v517_v21, %v491_v25  ;;  %v532_v44 = vmax.f32 %v524_v33, 0.0 }
 0x281   :  { %v526_v34 = vadd.f32 %v517_v21, %v493_v29  ;;  %v533_v42 = vmax.f32 %v525_v31, 0.0 }
 0x283   :  { %v534_v39 = vmax.f32 %v526_v34, 0.0 }
 0x285   :  { %569 = vmatprep.subr.mxu0 %v534_v39 }
 0x286   :  { %570 = vmatpush1.msra.mxu0 %v533_v42 }
 0x287   :  { %571 = vmatprep.subr.mxu0 %v532_v44 }
 0x288   :  { %572 = vmatpush1.msra.mxu0 %v531_v46 }
 0x289   :  { %573 = vmatprep.subr.mxu0 %v530_v47 }
 0x28a   :  { %574 = vmatpush1.msra.mxu0 %v529_v48 }
 0x28b   :  { %575 = vmatprep.subr.mxu0 %v528_v49 }
 0x28c   :  { %576 = vmatpush1.msra.mxu0 %v527_v50 }
 0x28d   :  { %648 = vmatmul.mubr.msk.f32.vlgmr.msra.gmra.mxu0 %vm292_vm3, %v535_v51 }
 0x34d   :  { %v611_v53 = vpop.f32.mrf.mxu0 }
 0x34e   :  { %v612_v54 = vadd.f32 %v611_v53, %v540_v52 }
 0x34f   :  { %v613_v55 = vpop.f32.mrf.mxu0 }
 0x350   :  { %616 = vst [vmem:[#allocation2] sm:$0xff] %v612_v54  ;;  %v614_v56 = vadd.f32 %v613_v55, %v540_v52 }
 0x352   :  { %617 = vst [vmem:[#allocation2 + $0x8] sm:$0xff] %v614_v56 }
 0x353   :  { %666 = shalt.err (!%p663_p4)
}
 0x354   :  { %627 = dma.vmem_to_hbm [thread:$0]  %s625_s9, 256, %s857_s10, [#allocation3]  }
 0x355   :  { %675 = dma.done.wait [#allocation3], 256  }
 0x356   :  { %676 = vsyncadd [#allocation3], 4294967040 }
 0x357   :  { %631 = vsyncpa [#allocation3], 1 }

</bundles_post_ra>
